<compile_context>
chip_gen: v6e
topology: v6e:2x2x1
jax: 0.10.0
libtpu: 0.0.40
codegen_flags: <defaults>
</compile_context>

<pallas_src>
import jax
import jax.numpy as jnp
from jax.experimental import pallas as pl
from jax.experimental.pallas import tpu as pltpu


# ----------------------------------------------------------------------------
# Pallas kernel
# ----------------------------------------------------------------------------

def scale_shift_kernel(x_ref, scale_ref, shift_ref, out_ref):
    """Fused per-row scale + shift.

    x_ref     : (TR, HW)  activation rows (rows on sublanes, HW on lanes)
    scale_ref : (TR, 1)   per-row scale (f32)
    shift_ref : (TR, 1)   per-row shift (f32)
    out_ref   : (TR, HW)
    """
    x = x_ref[...]
    out_ref[...] = (x * scale_ref[...] + shift_ref[...]).astype(out_ref.dtype)


# ----------------------------------------------------------------------------
# Wrapper
# ----------------------------------------------------------------------------

def _sublane_multiple(itemsize):
    # Rows packed per f32-equivalent vreg sublane group.
    if itemsize >= 4:
        return 8
    if itemsize == 2:
        return 16
    return 32


def final_scale_shift(x_nchw, scale, shift, *, target_block_bytes=4 << 20):
    """x_nchw: (N, C, H, W); scale/shift: any shape broadcastable to (C,)."""
    N, C, H, W = x_nchw.shape
    HW = H * W
    R = N * C
    dtype = x_nchw.dtype
    itemsize = jnp.dtype(dtype).itemsize
    sub = _sublane_multiple(itemsize)

    # Free metadata reshape of a contiguous NCHW array: rows = (n, c) pairs.
    x2 = x_nchw.reshape(R, HW)

    # One f32 scale/shift value per row (params kept in f32; the final
    # .astype on store handles any bf16 downcast of the activation).
    s_rows = jnp.broadcast_to(
        scale.reshape(1, C).astype(jnp.float32), (N, C)).reshape(R, 1)
    b_rows = jnp.broadcast_to(
        shift.reshape(1, C).astype(jnp.float32), (N, C)).reshape(R, 1)

    # Row tile: ~target_block_bytes per activation buffer, rounded down to a
    # full sublane multiple (full vreg occupancy, unmasked stores).
    row_bytes = HW * itemsize
    tr = max(sub, (target_block_bytes // max(1, row_bytes)) // sub * sub)
    if tr >= R:
        tr = R                      # single block; full-extent dim is allowed
    grid = (pl.cdiv(R, tr),)

    # VMEM budget: double-buffered in + out activation blocks + tiny params.
    block_bytes = tr * row_bytes
    needed = 4 * block_bytes + 8 * tr * 4 + (1 << 20)
    vmem_limit = int(min(48 << 20, max(32 << 20, needed)))

    cost = pl.CostEstimate(
        flops=2 * R * HW,
        transcendentals=0,
        bytes_accessed=2 * R * HW * itemsize + 2 * R * 4,
    )

    out2 = pl.pallas_call(
        scale_shift_kernel,
        out_shape=jax.ShapeDtypeStruct((R, HW), dtype),
        grid=grid,
        in_specs=[
            pl.BlockSpec((tr, HW), lambda i: (i, 0)),
            pl.BlockSpec((tr, 1), lambda i: (i, 0)),
            pl.BlockSpec((tr, 1), lambda i: (i, 0)),
        ],
        out_specs=pl.BlockSpec((tr, HW), lambda i: (i, 0)),
        compiler_params=pltpu.CompilerParams(
            dimension_semantics=("parallel",),
            vmem_limit_bytes=vmem_limit,
        ),
        cost_estimate=cost,
    )(x2, s_rows, b_rows)

    return out2.reshape(N, C, H, W)


# ----------------------------------------------------------------------------
# Pure-JAX reference (verification only)
# ----------------------------------------------------------------------------

def ref_forward(x, scale, shift):
    return x * scale + shift            # scale/shift shaped (1, C, 1, 1)


# ----------------------------------------------------------------------------
# Main
# ----------------------------------------------------------------------------

if __name__ == "__main__":
    key = jax.random.PRNGKey(0)
    k_x, k_s, k_b = jax.random.split(key, 3)

    # Matches FinalScaleShift(num_channels=3).
    N, C, H, W = 2, 3, 16, 16
    x = jax.random.normal(k_x, (N, C, H, W), jnp.float32)
    scale = 1.0 + 0.1 * jax.random.normal(k_s, (1, C, 1, 1), jnp.float32)
    shift = 0.1 * jax.random.normal(k_b, (1, C, 1, 1), jnp.float32)

    out = jax.block_until_ready(final_scale_shift(x, scale, shift))
    ref = jax.block_until_ready(ref_forward(x, scale, shift))
    assert out.shape == (N, C, H, W)
    assert jnp.allclose(out, ref, rtol=1e-6, atol=1e-6), (
        float(jnp.max(jnp.abs(out - ref))))

    # Second (still small) shape exercising the multi-step row-tiled path:
    # R = 64 rows, tr = 16 -> grid of 4 steps.
    N2, C2, H2, W2 = 4, 16, 64, 64
    x2 = jax.random.normal(k_x, (N2, C2, H2, W2), jnp.float32)
    scale2 = 1.0 + 0.1 * jax.random.normal(k_s, (1, C2, 1, 1), jnp.float32)
    shift2 = 0.1 * jax.random.normal(k_b, (1, C2, 1, 1), jnp.float32)
    out2 = jax.block_until_ready(
        final_scale_shift(x2, scale2, shift2, target_block_bytes=256 * 1024))
    ref2 = jax.block_until_ready(ref_forward(x2, scale2, shift2))
    assert jnp.allclose(out2, ref2, rtol=1e-6, atol=1e-6), (
        float(jnp.max(jnp.abs(out2 - ref2))))

    print("KERNEL_OK")
</pallas_src>

<mosaic_0001>
module attributes {stable_mosaic.version = 11 : i64} {
  func.func @scale_shift_kernel(%arg0: i32, %arg1: memref<6x256xf32, #tpu.memory_space<vmem>>, %arg2: memref<6x1xf32, #tpu.memory_space<vmem>>, %arg3: memref<6x1xf32, #tpu.memory_space<vmem>>, %arg4: memref<6x256xf32, #tpu.memory_space<vmem>>) attributes {dimension_semantics = [#tpu.dimension_semantics<parallel>], iteration_bounds = array<i64: 1>, scalar_prefetch = 0 : i64, scratch_operands = 0 : i64, tpu.core_type = #tpu.core_type<tc>, window_params = [{transform_indices = @transform_0, window_bounds = array<i64: 6, 256>}, {transform_indices = @transform_1, window_bounds = array<i64: 6, 1>}, {transform_indices = @transform_2, window_bounds = array<i64: 6, 1>}, {transform_indices = @transform_3, window_bounds = array<i64: 6, 256>}]} {
    %c0 = arith.constant 0 : index
    %c0_0 = arith.constant 0 : index
    %0 = vector.load %arg1[%c0, %c0_0] : memref<6x256xf32, #tpu.memory_space<vmem>>, vector<6x256xf32>
    %c0_1 = arith.constant 0 : index
    %c0_2 = arith.constant 0 : index
    %1 = vector.load %arg2[%c0_1, %c0_2] : memref<6x1xf32, #tpu.memory_space<vmem>>, vector<6x1xf32>
    %2 = vector.broadcast %1 : vector<6x1xf32> to vector<6x256xf32>
    %3 = arith.mulf %0, %2 : vector<6x256xf32>
    %c0_3 = arith.constant 0 : index
    %c0_4 = arith.constant 0 : index
    %4 = vector.load %arg3[%c0_3, %c0_4] : memref<6x1xf32, #tpu.memory_space<vmem>>, vector<6x1xf32>
    %5 = vector.broadcast %4 : vector<6x1xf32> to vector<6x256xf32>
    %6 = arith.addf %3, %5 : vector<6x256xf32>
    %c0_5 = arith.constant 0 : index
    %c0_6 = arith.constant 0 : index
    %7 = vector.load %arg4[%c0_5, %c0_6] : memref<6x256xf32, #tpu.memory_space<vmem>>, vector<6x256xf32>
    tpu.vector_store %arg4[%c0_5, %c0_6], %6 {strides = array<i32>} : memref<6x256xf32, #tpu.memory_space<vmem>>, vector<6x256xf32>,
    return
  }
  func.func @transform_0(%arg0: i32) -> (i32, i32) {
    %c0_i32 = arith.constant 0 : i32
    %c0_i32_0 = arith.constant 0 : i32
    return %arg0, %c0_i32 : i32, i32
  }
  func.func @transform_1(%arg0: i32) -> (i32, i32) {
    %c0_i32 = arith.constant 0 : i32
    %c0_i32_0 = arith.constant 0 : i32
    return %arg0, %c0_i32 : i32, i32
  }
  func.func @transform_2(%arg0: i32) -> (i32, i32) {
    %c0_i32 = arith.constant 0 : i32
    %c0_i32_0 = arith.constant 0 : i32
    return %arg0, %c0_i32 : i32, i32
  }
  func.func @transform_3(%arg0: i32) -> (i32, i32) {
    %c0_i32 = arith.constant 0 : i32
    %c0_i32_0 = arith.constant 0 : i32
    return %arg0, %c0_i32 : i32, i32
  }
}

</mosaic_0001>

<bundles_post_ra>
// kernel: tpu_custom_call.1
= control target key start
LH: loop header
LB: loop body
LE: loop exit
PB: predicated region body
PF: predicated region fallthrough
CT: control target
= control target key end

     0   :  { %v74_v1 = vmov 0   ;;  %s111_s0 = inlined_call_operand.vmem [shape: f32[6,256], index: 0, kind: input, shape index: {}]   ;;  %s112_s1 = inlined_call_operand.vmem [shape: f32[6,1], index: 1, kind: input, shape index: {}]   ;;  %s113_s2 = inlined_call_operand.vmem [shape: f32[6,1], index: 2, kind: input, shape index: {}]   ;;  %s114_s3 = inlined_call_operand.hbm [shape: f32[6,256], index: 3, kind: output, shape index: {}]  }
   0x1   :  { %v17_v0 = vld [vmem:[%s112_s1] sm:$0x3f]  ;;  %51 = vset.pattern.permute.xlu0 %v74_v1 }
   0x2   :  { %8 = vsyncpa [#allocation3], 0  ;;  %20 = vperm.xlu0 %51, %v17_v0   ;;  %v25_v2 = vld [vmem:[%s113_s2] sm:$0x3f]  ;;  %v16_v5 = vld [vmem:[%s111_s0 + $0x8] sm:$0x3f] }
   0x3   :  { %v15_v4 = vld [vmem:[%s111_s0] sm:$0x3f]  ;;  %s75_s20 = smov [#allocation2]  }
   0x4   :  { %s41_s1 = sshll.u32 %s75_s20, 4  ;;  %s42_s1 = int_to_ptr.vmem [resolvable:$true] %s41_s1 }
   0x5   :  { %s52_s2 = scalar_lea.vmem %s42_s1, 256  ;;  %p57_p1 = scmp.lt.s32.totalorder %s42_s1, %s42_s1 }
   0x6   :  { %28 = vperm.xlu0 %51, %v25_v2   ;;  %p53_p0 = scmp.ne.s32.totalorder %s42_s1, %s52_s2  ;;  %p58_p2 = scmp.lt.s32.totalorder %s52_s2, %s52_s2 }
   0x8   :  { %p59_p3 = por %p58_p2, %p57_p1 }
   0xa   :  { %p60_p4 = pnand %p59_p3, %p53_p0 }
  0x7d   :  { %v21_v3 = vpop.permute.xlu0 %20 }
  0x7e   :  { %v23_v6 = vmul.f32 %v21_v3, %v15_v4  ;;  %v24_v7 = vmul.f32 %v21_v3, %v16_v5 }
  0x81   :  { %v29_v8 = vpop.permute.xlu0 %28 }
  0x82   :  { %v31_v9 = vadd.f32 %v29_v8, %v23_v6  ;;  %v32_v10 = vadd.f32 %v29_v8, %v24_v7 }
  0x84   :  { %33 = vst [vmem:[#allocation2] sm:$0x3f] %v31_v9  ;;  %34 = vst [vmem:[#allocation2 + $0x8] sm:$0x3f] %v32_v10 }
  0x85   :  { %63 = shalt.err (!%p60_p4)
}
  0x86   :  { %44 = dma.vmem_to_hbm [thread:$0]  %s42_s1, 256, %s114_s3, [#allocation3]  }
  0x87   :  { %72 = dma.done.wait [#allocation3], 256  }
  0x88   :  { %73 = vsyncadd [#allocation3], 4294967040 }
  0x89   :  { %48 = vsyncpa [#allocation3], 1 }

</bundles_post_ra>
